<compile_context>
chip_gen: v7x
topology: tpu7x:2x2x1
jax: 0.10.0
libtpu: 0.0.40
codegen_flags: <defaults>
</compile_context>

<pallas_src>
import functools

import jax
import jax.numpy as jnp
from jax.experimental import pallas as pl
from jax.experimental.pallas import tpu as pltpu


_LANE = 128      # lane width  (last-dim padding target)
_SUBLANE = 8     # sublane width


def _round_up(x, m):
    return (x + m - 1) // m * m


# ----------------------------- Pallas kernels ------------------------------ #
def _conv_stats_kernel(p_ref, w_ref, conv_ref, stats_ref):
    """Pass 1 (bn_act=True): conv tile = patches @ W (bf16 in, f32 acc) plus
    per-tile partial BN statistics (sum, sum of squares) per output channel."""
    conv = jnp.dot(p_ref[...], w_ref[...], preferred_element_type=jnp.float32)
    conv_ref[...] = conv

    # One-pass statistics for this tile (f32).
    s = jnp.sum(conv, axis=0, keepdims=True)           # (1, CO)
    sq = jnp.sum(conv * conv, axis=0, keepdims=True)   # (1, CO)
    row = jax.lax.broadcasted_iota(jnp.int32, stats_ref.shape, 0)
    stats_ref[...] = jnp.where(row == 0, s, jnp.where(row == 1, sq, 0.0))


def _bn_act_kernel(conv_ref, scale_ref, shift_ref, o_ref, *, neg_slope):
    """Pass 2 (bn_act=True): y = conv*scale + shift (FMA) ; LeakyReLU."""
    y = conv_ref[...] * scale_ref[...] + shift_ref[...]
    o_ref[...] = jnp.where(y >= 0, y, neg_slope * y).astype(o_ref.dtype)


def _conv_bias_kernel(p_ref, w_ref, bias_ref, o_ref):
    """bn_act=False: conv + bias (fused epilogue)."""
    conv = jnp.dot(p_ref[...], w_ref[...], preferred_element_type=jnp.float32)
    o_ref[...] = (conv + bias_ref[...]).astype(o_ref.dtype)


# ------------------------------ JAX glue ----------------------------------- #
def _im2col_nhwc(x_nhwc, k, stride, pad):
    """Extract KxK patches; rows ordered (n, ho, wo), cols ordered (ki,kj,cin)."""
    x_p = jnp.pad(x_nhwc, ((0, 0), (pad, pad), (pad, pad), (0, 0)))
    N, Hp, Wp, C = x_p.shape
    Ho = (Hp - k) // stride + 1
    Wo = (Wp - k) // stride + 1
    cols = []
    for i in range(k):
        for j in range(k):
            cols.append(
                x_p[:, i:i + (Ho - 1) * stride + 1:stride,
                       j:j + (Wo - 1) * stride + 1:stride, :])
    patches = jnp.stack(cols, axis=3)                    # (N, Ho, Wo, K*K, C)
    return patches.reshape(N * Ho * Wo, k * k * C), Ho, Wo


def cnn_block_forward(x_nchw, weight, gamma, beta, conv_bias, *,
                      kernel_size=3, stride=1, padding=1, bn_act=True,
                      eps=1e-5, neg_slope=0.1, block_m=512,
                      compute_dtype=jnp.bfloat16):
    """CNNBlock forward. x_nchw: (N, Cin, H, W); weight: (Cout, Cin, K, K)."""
    N, Cin, H, W = x_nchw.shape
    Cout = weight.shape[0]
    K = kernel_size

    # NCHW -> NHWC and im2col (plain-JAX glue).
    x_nhwc = jnp.transpose(x_nchw, (0, 2, 3, 1))
    patches, Ho, Wo = _im2col_nhwc(x_nhwc, K, stride, padding)   # (M, K*K*Cin)
    M = N * Ho * Wo
    KKC = K * K * Cin

    # Lane/sublane-friendly padding (zero rows/cols are exact no-ops for the
    # matmul and the BN statistics because there is no conv bias on this path).
    co_p = _round_up(Cout, _LANE)
    kkc_p = _round_up(KKC, _LANE)
    tile_m = _round_up(min(block_m, _round_up(M, _SUBLANE)), _SUBLANE)
    m_p = _round_up(M, tile_m)
    n_tiles = m_p // tile_m

    patches_p = jnp.pad(patches, ((0, m_p - M), (0, kkc_p - KKC)))
    patches_p = patches_p.astype(compute_dtype)
    # (Cout,Cin,K,K) -> (K,K,Cin,Cout) -> (KKC,Cout), matching patch col order.
    w_mat = jnp.transpose(weight, (2, 3, 1, 0)).reshape(KKC, Cout)
    w_p = jnp.pad(w_mat, ((0, kkc_p - KKC), (0, co_p - Cout))).astype(compute_dtype)

    cparams = pltpu.CompilerParams(
        dimension_semantics=("parallel",),          # megacore-shardable M axis
        vmem_limit_bytes=48 * 1024 * 1024,          # sized for v7x (64 MiB)
    )

    bpe = jnp.dtype(compute_dtype).itemsize
    matmul_cost = pl.CostEstimate(
        flops=2 * m_p * kkc_p * co_p,
        transcendentals=0,
        bytes_accessed=m_p * kkc_p * bpe + kkc_p * co_p * bpe + m_p * co_p * 4,
    )

    if bn_act:
        # ---- pass 1: conv + per-tile partial statistics ----
        conv_f32, stats = pl.pallas_call(
            _conv_stats_kernel,
            out_shape=(
                jax.ShapeDtypeStruct((m_p, co_p), jnp.float32),
                jax.ShapeDtypeStruct((n_tiles * _SUBLANE, co_p), jnp.float32),
            ),
            grid_spec=pltpu.PrefetchScalarGridSpec(
                num_scalar_prefetch=0,
                grid=(n_tiles,),
                in_specs=[
                    pl.BlockSpec((tile_m, kkc_p), lambda i: (i, 0)),
                    pl.BlockSpec((kkc_p, co_p), lambda i: (0, 0)),  # resident
                ],
                out_specs=(
                    pl.BlockSpec((tile_m, co_p), lambda i: (i, 0)),
                    pl.BlockSpec((_SUBLANE, co_p), lambda i: (i, 0)),
                ),
            ),
            compiler_params=cparams,
            cost_estimate=matmul_cost,
        )(patches_p, w_p)

        # ---- global (biased, training-mode) BN stats + hoisted scale/shift ----
        stats = stats.reshape(n_tiles, _SUBLANE, co_p)
        ch_sum = jnp.sum(stats[:, 0, :], axis=0)
        ch_sumsq = jnp.sum(stats[:, 1, :], axis=0)
        inv_m = 1.0 / float(M)                       # divide by real M, not m_p
        mean = ch_sum * inv_m
        var = jnp.maximum(ch_sumsq * inv_m - mean * mean, 0.0)

        gamma_p = jnp.pad(gamma.astype(jnp.float32), (0, co_p - Cout))
        beta_p = jnp.pad(beta.astype(jnp.float32), (0, co_p - Cout))
        scale = gamma_p * jax.lax.rsqrt(var + eps)
        shift = beta_p - mean * scale
        scale = scale.reshape(1, co_p)
        shift = shift.reshape(1, co_p)

        ep_cost = pl.CostEstimate(
            flops=4 * m_p * co_p,
            transcendentals=0,
            bytes_accessed=2 * m_p * co_p * 4 + 2 * co_p * 4,
        )

        # ---- pass 2: normalize + LeakyReLU (fully parallel over M tiles) ----
        out_flat = pl.pallas_call(
            functools.partial(_bn_act_kernel, neg_slope=neg_slope),
            out_shape=jax.ShapeDtypeStruct((m_p, co_p), jnp.float32),
            grid_spec=pltpu.PrefetchScalarGridSpec(
                num_scalar_prefetch=0,
                grid=(n_tiles,),
                in_specs=[
                    pl.BlockSpec((tile_m, co_p), lambda i: (i, 0)),
                    pl.BlockSpec((1, co_p), lambda i: (0, 0)),
                    pl.BlockSpec((1, co_p), lambda i: (0, 0)),
                ],
                out_specs=pl.BlockSpec((tile_m, co_p), lambda i: (i, 0)),
            ),
            compiler_params=cparams,
            cost_estimate=ep_cost,
        )(conv_f32, scale, shift)
    else:
        bias_p = jnp.pad(conv_bias.astype(jnp.float32),
                         (0, co_p - Cout)).reshape(1, co_p)
        out_flat = pl.pallas_call(
            _conv_bias_kernel,
            out_shape=jax.ShapeDtypeStruct((m_p, co_p), jnp.float32),
            grid_spec=pltpu.PrefetchScalarGridSpec(
                num_scalar_prefetch=0,
                grid=(n_tiles,),
                in_specs=[
                    pl.BlockSpec((tile_m, kkc_p), lambda i: (i, 0)),
                    pl.BlockSpec((kkc_p, co_p), lambda i: (0, 0)),
                    pl.BlockSpec((1, co_p), lambda i: (0, 0)),
                ],
                out_specs=pl.BlockSpec((tile_m, co_p), lambda i: (i, 0)),
            ),
            compiler_params=cparams,
            cost_estimate=matmul_cost,
        )(patches_p, w_p, bias_p)

    # Strip padding, rows (n, ho, wo) -> NCHW.
    out = out_flat[:M, :Cout].reshape(N, Ho, Wo, Cout)
    return jnp.transpose(out, (0, 3, 1, 2))


# --------------------------- pure-JAX reference ----------------------------- #
def _reference(x_nchw, weight, gamma, beta, conv_bias, *, kernel_size=3,
               stride=1, padding=1, bn_act=True, eps=1e-5, neg_slope=0.1):
    conv = jax.lax.conv_general_dilated(
        x_nchw, weight, window_strides=(stride, stride),
        padding=[(padding, padding), (padding, padding)],
        dimension_numbers=("NCHW", "OIHW", "NCHW"))
    if not bn_act:
        return conv + conv_bias.reshape(1, -1, 1, 1)
    mean = jnp.mean(conv, axis=(0, 2, 3), keepdims=True)
    var = jnp.mean((conv - mean) ** 2, axis=(0, 2, 3), keepdims=True)
    xhat = (conv - mean) / jnp.sqrt(var + eps)
    y = xhat * gamma.reshape(1, -1, 1, 1) + beta.reshape(1, -1, 1, 1)
    return jnp.where(y > 0, y, neg_slope * y)


if __name__ == "__main__":
    key = jax.random.PRNGKey(0)
    k_x, k_w, k_bias = jax.random.split(key, 3)

    # Small shapes consistent with CNNBlock(4, 8, kernel_size=3, stride=1,
    # padding=1) applied to x of shape (2, 4, 16, 16).
    N, Cin, H, W = 2, 4, 16, 16
    Cout, K = 8, 3

    x = jax.random.normal(k_x, (N, Cin, H, W), dtype=jnp.float32)
    weight = jax.random.normal(k_w, (Cout, Cin, K, K), dtype=jnp.float32) * 0.1
    # Snap inputs to bf16-representable values so the bf16-MXU kernel matches
    # the f32 reference tightly (bf16 x bf16 products are exact in f32).
    x = x.astype(jnp.bfloat16).astype(jnp.float32)
    weight = weight.astype(jnp.bfloat16).astype(jnp.float32)
    gamma = jnp.ones((Cout,), dtype=jnp.float32)      # BN weight init
    beta = jnp.zeros((Cout,), dtype=jnp.float32)      # BN bias init
    conv_bias = jax.random.normal(k_bias, (Cout,), dtype=jnp.float32) * 0.1

    # bn_act=True path; block_m=128 -> 4 M tiles, exercising the cross-tile
    # (global) BN statistics reduction.
    out = cnn_block_forward(x, weight, gamma, beta, conv_bias,
                            kernel_size=K, stride=1, padding=1, bn_act=True,
                            block_m=128)
    out = jax.block_until_ready(out)
    ref = _reference(x, weight, gamma, beta, conv_bias,
                     kernel_size=K, stride=1, padding=1, bn_act=True)
    assert out.shape == (N, Cout, H, W)
    assert jnp.allclose(out, ref, atol=2e-3, rtol=2e-3), "mismatch vs reference (bn)"

    # bn_act=False path (conv + bias only), default block_m.
    out2 = cnn_block_forward(x, weight, gamma, beta, conv_bias,
                             kernel_size=K, stride=1, padding=1, bn_act=False)
    out2 = jax.block_until_ready(out2)
    ref2 = _reference(x, weight, gamma, beta, conv_bias,
                      kernel_size=K, stride=1, padding=1, bn_act=False)
    assert jnp.allclose(out2, ref2, atol=2e-3, rtol=2e-3), "mismatch (no-bn)"

    print("KERNEL_OK")
</pallas_src>

<mosaic_0001>
module attributes {stable_mosaic.version = 11 : i64} {
  func.func @_conv_stats_kernel(%arg0: i32, %arg1: memref<128x128xbf16, #tpu.memory_space<vmem>>, %arg2: memref<128x128xbf16, #tpu.memory_space<vmem>>, %arg3: memref<128x128xf32, #tpu.memory_space<vmem>>, %arg4: memref<8x128xf32, #tpu.memory_space<vmem>>) attributes {dimension_semantics = [#tpu.dimension_semantics<parallel>], iteration_bounds = array<i64: 4>, scalar_prefetch = 0 : i64, scratch_operands = 0 : i64, tpu.core_type = #tpu.core_type<tc>, window_params = [{transform_indices = @transform_0, window_bounds = array<i64: 128, 128>}, {pipeline_mode = #tpu.pipeline_mode<synchronous>, transform_indices = @transform_1, window_bounds = array<i64: 128, 128>}, {transform_indices = @transform_2, window_bounds = array<i64: 128, 128>}, {transform_indices = @transform_3, window_bounds = array<i64: 8, 128>}]} {
    %c0 = arith.constant 0 : index
    %c0_0 = arith.constant 0 : index
    %0 = vector.load %arg1[%c0, %c0_0] : memref<128x128xbf16, #tpu.memory_space<vmem>>, vector<128x128xbf16>
    %c0_1 = arith.constant 0 : index
    %c0_2 = arith.constant 0 : index
    %1 = vector.load %arg2[%c0_1, %c0_2] : memref<128x128xbf16, #tpu.memory_space<vmem>>, vector<128x128xbf16>
    %cst = arith.constant dense<0.000000e+00> : vector<128x128xf32>
    %2 = tpu.matmul %0, %1, %cst {dimension_numbers = #tpu.dot_dimension_numbers<[1], [0], [0], [1], [0, 0, 1, 1], [], []>} : vector<128x128xbf16>, vector<128x128xbf16>, vector<128x128xf32> -> vector<128x128xf32>
    %c0_3 = arith.constant 0 : index
    %c0_4 = arith.constant 0 : index
    %3 = vector.load %arg3[%c0_3, %c0_4] : memref<128x128xf32, #tpu.memory_space<vmem>>, vector<128x128xf32>
    tpu.vector_store %arg3[%c0_3, %c0_4], %2 {strides = array<i32>} : memref<128x128xf32, #tpu.memory_space<vmem>>, vector<128x128xf32>,
    %cst_5 = arith.constant dense<0.000000e+00> : vector<128xf32>
    %4 = vector.multi_reduction <add>, %2, %cst_5 [0] : vector<128x128xf32> to vector<128xf32>
    %5 = vector.shape_cast %4 : vector<128xf32> to vector<1x128xf32>
    %6 = arith.mulf %2, %2 : vector<128x128xf32>
    %cst_6 = arith.constant dense<0.000000e+00> : vector<128xf32>
    %7 = vector.multi_reduction <add>, %6, %cst_6 [0] : vector<128x128xf32> to vector<128xf32>
    %8 = vector.shape_cast %7 : vector<128xf32> to vector<1x128xf32>
    %9 = tpu.iota {dimensions = array<i32: 0>} : vector<8x128xi32>
    %c0_i32 = arith.constant 0 : i32
    %10 = vector.broadcast %c0_i32 : i32 to vector<8x128xi32>
    %11 = arith.cmpi eq, %9, %10 : vector<8x128xi32>
    %c1_i32 = arith.constant 1 : i32
    %12 = vector.broadcast %c1_i32 : i32 to vector<8x128xi32>
    %13 = arith.cmpi eq, %9, %12 : vector<8x128xi32>
    %cst_7 = arith.constant 0.000000e+00 : f32
    %14 = vector.shape_cast %8 : vector<1x128xf32> to vector<1x128xf32>
    %15 = vector.broadcast %14 : vector<1x128xf32> to vector<8x128xf32>
    %16 = vector.broadcast %cst_7 : f32 to vector<8x128xf32>
    %17 = arith.select %13, %15, %16 : vector<8x128xi1>, vector<8x128xf32>
    %18 = vector.shape_cast %5 : vector<1x128xf32> to vector<1x128xf32>
    %19 = vector.broadcast %18 : vector<1x128xf32> to vector<8x128xf32>
    %20 = arith.select %11, %19, %17 : vector<8x128xi1>, vector<8x128xf32>
    %c0_8 = arith.constant 0 : index
    %c0_9 = arith.constant 0 : index
    %21 = vector.load %arg4[%c0_8, %c0_9] : memref<8x128xf32, #tpu.memory_space<vmem>>, vector<8x128xf32>
    tpu.vector_store %arg4[%c0_8, %c0_9], %20 {strides = array<i32>} : memref<8x128xf32, #tpu.memory_space<vmem>>, vector<8x128xf32>,
    return
  }
  func.func @transform_0(%arg0: i32) -> (i32, i32) {
    %c0_i32 = arith.constant 0 : i32
    %c0_i32_0 = arith.constant 0 : i32
    return %arg0, %c0_i32 : i32, i32
  }
  func.func @transform_1(%arg0: i32) -> (i32, i32) {
    %c0_i32 = arith.constant 0 : i32
    %c0_i32_0 = arith.constant 0 : i32
    %c0_i32_1 = arith.constant 0 : i32
    return %c0_i32, %c0_i32_0 : i32, i32
  }
  func.func @transform_2(%arg0: i32) -> (i32, i32) {
    %c0_i32 = arith.constant 0 : i32
    %c0_i32_0 = arith.constant 0 : i32
    return %arg0, %c0_i32 : i32, i32
  }
  func.func @transform_3(%arg0: i32) -> (i32, i32) {
    %c0_i32 = arith.constant 0 : i32
    %c0_i32_0 = arith.constant 0 : i32
    return %arg0, %c0_i32 : i32, i32
  }
}

</mosaic_0001>

<bundles_post_ra>
// kernel: tpu_custom_call.1
= control target key start
LH: loop header
LB: loop body
LE: loop exit
PB: predicated region body
PF: predicated region fallthrough
CT: control target
= control target key end

     0   :  { %9 = vsyncpa [#allocation3], 0  ;;  %s1345_s0 = inlined_call_operand.hbm [shape: bf16[512,128], index: 0, kind: input, shape index: {}]   ;;  %s1346_s1 = inlined_call_operand.hbm [shape: bf16[128,128], index: 1, kind: input, shape index: {}]   ;;  %s1347_s2 = inlined_call_operand.hbm [shape: f32[512,128], index: 2, kind: output, shape index: {0}]   ;;  %s1348_s3 = inlined_call_operand.hbm [shape: f32[32,128], index: 3, kind: output, shape index: {1}]  }
   0x1   :  { %11 = vsyncpa [#allocation3 + $0x1], 0 }
   0x2   :  { %12 = vsyncpa [#allocation6], 0 }
   0x3   :  { %13 = vsyncpa [#allocation4], 0 }
   0x4   :  { %15 = vsyncpa [#allocation4 + $0x1], 0 }
   0x5   :  { %16 = vsyncpa [#allocation9], 0 }
   0x6   :  { %18 = vsyncpa [#allocation9 + $0x1], 0  ;;  %s1044_s12 = smov 0   ;;  %s1046_s13 = smov 0  }
   0x7   :  { %s1048_s14 = smov 0   ;;  %s1050_s15 = smov 0  }
   0x8 LB: > { %s1065_s16 = sadd.s32 4294967295, %s1014_s15   ;;  %s671_s17 = sadd.s32 4294967294, %s1014_s15   ;;  %s1014_s15 = sphi %s1050_s15, %s1367_s15   ;;  %s1010_s14 = sphi %s1048_s14, %s1366_s14   ;;  %s1006_s13 = sphi %s1046_s13, %s1365_s13   ;;  %s1002_s12 = sphi %s1044_s12, %s1364_s12  }
   0x9   : > { %p44_p0 = scmp.ne.s32.totalorder %s1006_s13, %s1002_s12  ;;  %p1349_p1 = scmp.eq.s32.totalorder %s1065_s16, 0 }
   0xa   : > { %p95_p3 = scmp.eq.s32.totalorder %s671_s17, 3  ;;  %p672_p5 = scmp.ge.s32.totalorder %s1014_s15, 1 }
   0xb   : > { %p1074_p4 = por %p1349_p1, %p44_p0  ;;  %p128_p7 = scmp.lt.s32.totalorder %s1014_s15, 5 }
   0xc   : > { %p1079_p6 = por %p95_p3, %p44_p0  ;;  %s1016_s21 = smov [#allocation5]  }
   0xd   : > { %s1352_s18 = scalar_select %p1074_p4, 1, 0 }
   0xe   : > { %s1353_s19 = scalar_select %p1079_p6, 1, 0 }
   0xf   : > { %p1084_p8 = pnand %p672_p5, %p128_p7  ;;  %s140_s22 = sshll.u32 %s1016_s21, 4  ;;  %s141_s22 = int_to_ptr.vmem [resolvable:$true] %s140_s22 }
  0x10   : > { %s1097_s24 = sadd.s32 1, %s1014_s15   ;;  %s31_s25 = sadd.s32 1, %s1010_s14 }
  0x11   : > { %s1354_s20 = scalar_select %p1084_p8, 1, 0 }
  0x12   : > { %p782_p9 = pneg %p1084_p8  ;;  %s28_s26 = ssub.s32 %s1014_s15, %s1097_s24 }
  0x13   : > { %s854_s29 = scalar_lea.hbm %s1346_s1, 1024 }
  0x14   : > { %p1092_p10 = pnand %p782_p9, %p1349_p1  ;;  %p855_p11 = scmp.ne.s32.totalorder %s1346_s1, %s854_s29 }
  0x15   : > { %p861_p3 = scmp.lt.u32.totalorder %s854_s29, %s1346_s1 }
  0x16   : > { %p856_p12 = pneg %p1092_p10 }
  0x18   : > { %p857_p13 = pnand %p856_p12, %p855_p11 }
  0x1a   : > { %p858_p0 = pneg %p857_p13 }
  0x1c   : > { %p863_p5 = pnand %p861_p3, %p858_p0 }
  0x1e   : > { %866 = shalt.err (!%p863_p5)
}
  0x1f   : > { %s867_s7 = scalar_lea.vmem %s141_s22, 1024  ;;  %p875_p2 = scmp.lt.s32.totalorder %s141_s22, %s141_s22 }
  0x20   : > { %p868_p7 = scmp.ne.s32.totalorder %s141_s22, %s867_s7  ;;  %p876_p6 = scmp.lt.s32.totalorder %s867_s7, %s867_s7 }
  0x22   : > { %p870_p9 = pnand %p868_p7, %p856_p12  ;;  %p877_p4 = por %p876_p6, %p875_p2 }
  0x24   : > { %p871_p1 = pneg %p870_p9 }
  0x26   : > { %p878_p8 = pnand %p877_p4, %p871_p1 }
  0x28   : > { %881 = shalt.err (!%p878_p8)
}
  0x29   : > { %s1017_s8 = smov 64   ;;  %s1018_s9 = smov 4  }
  0x2a   : > { %785 = dma.hbm_to_vmem [thread:$0]  (!%p1092_p10), %s1346_s1, 1024, %s141_s22, [#allocation6], %s1017_s8, %s1017_s8, %s1018_s9  }
  0x2b   : > { %p29_p1 = scmp.eq.s32.totalorder %s28_s26, 0  ;;  %p38_p2 = scmp.ne.s32.totalorder %s1010_s14, %s1006_s13 }
  0x2c   : > { %p39_p4 = scmp.eq.s32.totalorder %s1014_s15, 0  ;;  %p798_p6 = scmp.lt.s32.totalorder %s1014_s15, 4 }
  0x2d   : > { %s1126_s17 = scalar_select %p29_p1, %s1010_s14, %s31_s25  }
  0x2e   : > { %p40_p8 = por %p39_p4, %p38_p2  ;;  %p1356_p11 = scmp.eq.s32.totalorder %s1065_s16, 3 }
  0x2f   : > { %s154_s23 = sand.u32 1, %s1010_s14   ;;  %s706_s27 = sshll.u32 %s1014_s15, 10 }
  0x30   : > { %p1130_p12 = por %p1356_p11, %p38_p2  ;;  %s675_s28 = sshll.u32 %s154_s23, 6 }
  0x31   : > { %s1139_s4 = scalar_lea.hbm %s1345_s0, %s706_s27  ;;  %s158_s22 = scalar_lea.vmem [#allocation2], %s675_s28 }
  0x32   : > { %s165_s25 = sshll.u32 %s158_s22, 4  ;;  %p1141_p10 = pnand %p798_p6, %p40_p8  ;;  %s1145_s25 = int_to_ptr.vmem [resolvable:$true] %s165_s25 }
  0x33   : > { %s1147_s5 = scalar_lea.sflag [#allocation3], %s154_s23  ;;  %s882_s6 = scalar_lea.hbm %s1139_s4, 1024 }
  0x34   : > { %p883_p13 = scmp.ne.s32.totalorder %s1139_s4, %s882_s6  ;;  %p884_p0 = pneg %p1141_p10 }
  0x35   : > { %s887_s11 = scalar_lea.hbm %s1345_s0, 4096  ;;  %p888_p7 = scmp.lt.u32.totalorder %s1139_s4, %s1345_s0 }
  0x36   : > { %p885_p3 = pnand %p884_p0, %p883_p13  ;;  %p889_p9 = scmp.lt.u32.totalorder %s887_s11, %s882_s6 }
  0x37   : > { %p891_p2 = scmp.lt.u32.totalorder %s882_s6, %s1139_s4 }
  0x38   : > { %p886_p5 = pneg %p885_p3  ;;  %p890_p1 = por %p889_p9, %p888_p7 }
  0x3a   : > { %p892_p4 = por %p891_p2, %p890_p1 }
  0x3c   : > { %p893_p6 = pnand %p892_p4, %p886_p5 }
  0x3e   : > { %896 = shalt.err (!%p893_p6)
}
  0x3f   : > { %s897_s23 = scalar_lea.vmem %s1145_s25, 1024  ;;  %s1019_s29 = smov [#allocation2]  }
  0x40   : > { %p898_p8 = scmp.ne.s32.totalorder %s1145_s25, %s897_s23  ;;  %s902_s30 = sshll.u32 %s1019_s29, 4  ;;  %s903_s30 = int_to_ptr.vmem [resolvable:$false] %s902_s30 }
  0x41   : > { %s904_s22 = scalar_lea.vmem %s903_s30, 2048  ;;  %p905_p3 = scmp.lt.s32.totalorder %s1145_s25, %s903_s30 }
  0x42   : > { %p900_p11 = pnand %p898_p8, %p884_p0  ;;  %p906_p7 = scmp.lt.s32.totalorder %s904_s22, %s897_s23 }
  0x44   : > { %p901_p13 = pneg %p900_p11  ;;  %p907_p9 = por %p906_p7, %p905_p3 }
  0x46   : > { %p908_p1 = pnand %p907_p9, %p901_p13 }
  0x48   : > { %911 = shalt.err (!%p908_p1)
}
  0x49   : > { %789 = dma.hbm_to_vmem [thread:$0]  (!%p1141_p10), %s1139_s4, 1024, %s1145_s25, %s1147_s5, %s1017_s8, %s1017_s8, %s1018_s9  }
  0x4a   : > { %p1359_p0 = scmp.ne.s32.totalorder %s1354_s20, 0 }
  0x4b   : > { %s1181_s6 = sand.u32 (!%p1359_p0), 1, %s1006_s13   ;;  %p1360_p5 = scmp.ne.s32.totalorder (!%p1359_p0), %s1352_s18, 0 }
  0x4c   : > { %177 = sbr.rel (%p1359_p0) target bundleno = 406 (0x196), region = 28  ;;  %s679_s7 = sshll.u32 (!%p1359_p0), %s1181_s6, 6 }
  0x4d   : > { %s180_s10 = scalar_lea.sflag (!%p1359_p0), [#allocation3], %s1181_s6  ;;  %s1185_s11 = scalar_lea.vmem (!%p1359_p0), [#allocation2], %s679_s7 }
  0x53   : > { %985 = dma.done.wait (%p1360_p5), %s180_s10, 1024  }
  0x54   : > { %987 = vsyncadd (%p1360_p5), %s180_s10, 4294966272  ;;  %p1361_p10 = scmp.eq.s32.totalorder %s1065_s16, 0 }
  0x56   : > { %989 = dma.done.wait (%p1361_p10), [#allocation6], 1024   ;;  %p1362_p2 = pmov %p1361_p10 }
  0x57   : > { %v838_v0 = vld [vmem:[#allocation5] sm:$0xff]   ;;  %v839_v1 = vld [vmem:[#allocation5 + $0x8] sm:$0xff]   ;;  %v840_v2 = vld [vmem:[#allocation5 + $0x10] sm:$0xff]   ;;  %s681_s18 = sshll.u32 %s1181_s6, 7  ;;  %s707_s8 = sshll.u32 %s1065_s16, 11 }
  0x58   : > { %991 = vsyncadd (%p1362_p2), [#allocation6], 4294966272  ;;  %724 = vmatprep.subr.bf16.mxu0 %v838_v0  ;;  %756 = vmatprep.subr.bf16.mxu1 %v838_v0  ;;  %v841_v3 = vld [vmem:[#allocation5 + $0x18] sm:$0xff]   ;;  %v846_v4 = vld [vmem:[%s1185_s11] sm:$0xff]   ;;  %s1206_s20 = scalar_lea.vmem [#allocation7], %s681_s18  ;;  %s1238_s26 = scalar_lea.hbm %s1347_s2, %s707_s8 }
  0x59   : > { %725 = vmatpush3.bf16.msra.mxu0 %v838_v0  ;;  %764 = vmatpush3.bf16.msra.mxu1 %v838_v0  ;;  %v842_v5 = vld [vmem:[#allocation5 + $0x20] sm:$0xff]   ;;  %v843_v7 = vld [vmem:[#allocation5 + $0x28] sm:$0xff]   ;;  %v844_v8 = vld [vmem:[#allocation5 + $0x30] sm:$0xff]   ;;  %s543_s9 = sshll.u32 %s1206_s20, 4  ;;  %s525_s5 = scalar_lea.sflag [#allocation4], %s1181_s6  ;;  %s1240_s9 = int_to_ptr.vmem [resolvable:$true] %s543_s9 }
  0x5a   : > { %726 = vmatprep.subr.bf16.mxu0 %v839_v1  ;;  %757 = vmatprep.subr.bf16.mxu1 %v839_v1  ;;  %v850_v6 = vld [vmem:[%s1185_s11 + $0x20] sm:$0xff]   ;;  %v845_v9 = vld [vmem:[#allocation5 + $0x38] sm:$0xff]   ;;  %v847_v10 = vld [vmem:[%s1185_s11 + $0x8] sm:$0xff]   ;;  %s912_s27 = scalar_lea.vmem %s1240_s9, 2048  ;;  %s1020_s28 = smov [#allocation7]  }
  0x5b   : > { %740 = vmatprep.mubr.bf16.mxu0 %v846_v4  ;;  %748 = vmatprep.mubr.bf16.mxu1 %v850_v6  ;;  %v851_v11 = vld [vmem:[%s1185_s11 + $0x28] sm:$0xff]   ;;  %v848_v12 = vld [vmem:[%s1185_s11 + $0x10] sm:$0xff]   ;;  %v849_v14 = vld [vmem:[%s1185_s11 + $0x18] sm:$0xff]   ;;  %p913_p4 = scmp.ne.s32.totalorder %s1240_s9, %s912_s27  ;;  %s916_s23 = sshll.u32 %s1020_s28, 4  ;;  %s917_s23 = int_to_ptr.vmem [resolvable:$false] %s916_s23 }
  0x5c   : > { %v852_v13 = vld [vmem:[%s1185_s11 + $0x30] sm:$0xff]   ;;  %v853_v15 = vld [vmem:[%s1185_s11 + $0x38] sm:$0xff]   ;;  %s918_s29 = scalar_lea.vmem %s917_s23, 4096  ;;  %p919_p11 = scmp.lt.s32.totalorder %s1240_s9, %s917_s23 }
  0x5d   : > { %727 = vmatpush3.bf16.msra.mxu0 %v839_v1  ;;  %765 = vmatpush3.bf16.msra.mxu1 %v839_v1  ;;  %p914_p6 = pnand %p913_p4, %p1130_p12  ;;  %p920_p13 = scmp.lt.s32.totalorder %s918_s29, %s912_s27 }
  0x5e   : > { %728 = vmatprep.subr.bf16.mxu0 %v840_v2  ;;  %758 = vmatprep.subr.bf16.mxu1 %v840_v2 }
  0x5f   : > { %p915_p8 = pneg %p914_p6  ;;  %p921_p3 = por %p920_p13, %p919_p11 }
  0x61   : > { %729 = vmatpush3.bf16.msra.mxu0 %v840_v2  ;;  %766 = vmatpush3.bf16.msra.mxu1 %v840_v2  ;;  %p922_p7 = pnand %p921_p3, %p915_p8 }
  0x62   : > { %730 = vmatprep.subr.bf16.mxu0 %v841_v3  ;;  %759 = vmatprep.subr.bf16.mxu1 %v841_v3 }
  0x65   : > { %731 = vmatpush3.bf16.msra.mxu0 %v841_v3  ;;  %767 = vmatpush3.bf16.msra.mxu1 %v841_v3 }
  0x66   : > { %732 = vmatprep.subr.bf16.mxu0 %v842_v5  ;;  %760 = vmatprep.subr.bf16.mxu1 %v842_v5 }
  0x69   : > { %733 = vmatpush3.bf16.msra.mxu0 %v842_v5  ;;  %768 = vmatpush3.bf16.msra.mxu1 %v842_v5 }
  0x6a   : > { %734 = vmatprep.subr.bf16.mxu0 %v843_v7  ;;  %761 = vmatprep.subr.bf16.mxu1 %v843_v7 }
  0x6d   : > { %735 = vmatpush3.bf16.msra.mxu0 %v843_v7  ;;  %769 = vmatpush3.bf16.msra.mxu1 %v843_v7 }
  0x6e   : > { %736 = vmatprep.subr.bf16.mxu0 %v844_v8  ;;  %762 = vmatprep.subr.bf16.mxu1 %v844_v8 }
  0x71   : > { %737 = vmatpush3.bf16.msra.mxu0 %v844_v8  ;;  %770 = vmatpush3.bf16.msra.mxu1 %v844_v8 }
  0x72   : > { %738 = vmatprep.subr.bf16.mxu0 %v845_v9  ;;  %763 = vmatprep.subr.bf16.mxu1 %v845_v9 }
  0x75   : > { %739 = vmatpush3.bf16.msra.mxu0 %v845_v9  ;;  %771 = vmatpush3.bf16.msra.mxu1 %v845_v9 }
  0x78   : > { %741 = vmatmul.mubr.bf16.vlgmr.msra.gmra.mrb[0].mxu0 %v847_v10  ;;  %749 = vmatmul.mubr.bf16.vlgmr.msra.gmra.mrb[0].mxu1 %v851_v11 }
  0x79   : > { %744 = vmatprep.mubr.bf16.mxu0 %v848_v12  ;;  %752 = vmatprep.mubr.bf16.mxu1 %v852_v13 }
  0x80   : > { %745 = vmatmul.mubr.bf16.gmra.mrb[4].mxu0 %v849_v14  ;;  %753 = vmatmul.mubr.bf16.gmra.mrb[4].mxu1 %v853_v15 }
 0x14b   : > { %v742_v16 = vpop.f32.mrb[0].mxu0  ;;  %v1204_v17 = vpop.f32.mrb[0].mxu1 }
 0x14c   : > { %445 = vst [vmem:[%s1206_s20 + $0x10] sm:$0xff] %v742_v16  ;;  %v380_v18 = vpop.f32.mrb[1].mxu0  ;;  %453 = vst [vmem:[%s1206_s20 + $0x50] sm:$0xff] %v1204_v17  ;;  %v1211_v19 = vpop.f32.mrb[1].mxu1  ;;  %v482_v27 = vmul.f32 %v742_v16, %v742_v16 }
 0x14d   : > { %443 = vst [vmem:[%s1206_s20] sm:$0xff] %v380_v18  ;;  %v743_v20 = vpop.f32.mrb[2].mxu0  ;;  %451 = vst [vmem:[%s1206_s20 + $0x40] sm:$0xff] %v1211_v19  ;;  %v1216_v21 = vpop.f32.mrb[2].mxu1  ;;  %v480_v24 = vmul.f32 %v380_v18, %v380_v18 }
 0x14e   : > { %446 = vst [vmem:[%s1206_s20 + $0x18] sm:$0xff] %v743_v20  ;;  %v383_v22 = vpop.f32.mrb[3].mxu0  ;;  %454 = vst [vmem:[%s1206_s20 + $0x58] sm:$0xff] %v1216_v21  ;;  %v1221_v23 = vpop.f32.mrb[3].mxu1  ;;  %v483_v30 = vmul.f32 %v743_v20, %v743_v20 }
 0x14f   : > { %444 = vst [vmem:[%s1206_s20 + $0x8] sm:$0xff] %v383_v22  ;;  %v459_v25 = vadd.f32 %v383_v22, %v380_v18  ;;  %v481_v26 = vmul.f32 %v383_v22, %v383_v22  ;;  %452 = vst [vmem:[%s1206_s20 + $0x48] sm:$0xff] %v1221_v23 }
 0x151   : > { %v460_v28 = vadd.f32 %v742_v16, %v459_v25  ;;  %v496_v29 = vadd.f32 %v481_v26, %v480_v24 }
 0x153   : > { %v497_v31 = vadd.f32 %v496_v29, %v482_v27  ;;  %v746_v32 = vpop.f32.mrb[4].mxu0  ;;  %v461_v33 = vadd.f32 %v743_v20, %v460_v28  ;;  %v1228_v34 = vpop.f32.mrb[4].mxu1 }
 0x154   : > { %449 = vst [vmem:[%s1206_s20 + $0x30] sm:$0xff] %v746_v32  ;;  %v396_v35 = vpop.f32.mrb[5].mxu0  ;;  %457 = vst [vmem:[%s1206_s20 + $0x70] sm:$0xff] %v1228_v34  ;;  %v1233_v36 = vpop.f32.mrb[5].mxu1 }
 0x155   : > { %447 = vst [vmem:[%s1206_s20 + $0x20] sm:$0xff] %v396_v35  ;;  %v462_v37 = vadd.f32 %v461_v33, %v396_v35  ;;  %v484_v38 = vmul.f32 %v396_v35, %v396_v35  ;;  %v498_v39 = vadd.f32 %v497_v31, %v483_v30  ;;  %v747_v40 = vpop.f32.mrb[6].mxu0  ;;  %455 = vst [vmem:[%s1206_s20 + $0x60] sm:$0xff] %v1233_v36  ;;  %v1245_v41 = vpop.f32.mrb[6].mxu1 }
 0x156   : > { %450 = vst [vmem:[%s1206_s20 + $0x38] sm:$0xff] %v747_v40  ;;  %v399_v42 = vpop.f32.mrb[7].mxu0  ;;  %458 = vst [vmem:[%s1206_s20 + $0x78] sm:$0xff] %v1245_v41  ;;  %v431_v43 = vpop.f32.mrb[7].mxu1 }
 0x157   : > { %v499_v44 = vadd.f32 %v498_v39, %v484_v38  ;;  %448 = vst [vmem:[%s1206_s20 + $0x28] sm:$0xff] %v399_v42  ;;  %v463_v45 = vadd.f32 %v462_v37, %v399_v42  ;;  %v485_v46 = vmul.f32 %v399_v42, %v399_v42  ;;  %456 = vst [vmem:[%s1206_s20 + $0x68] sm:$0xff] %v431_v43 }
 0x158   : > { %925 = shalt.err (!%p922_p7)
}
 0x159   : > { %s926_s30 = scalar_lea.hbm %s1238_s26, 2048  ;;  %s930_s10 = scalar_lea.hbm %s1347_s2, 8192 }
 0x15a   : > { %p927_p9 = scmp.ne.s32.totalorder %s1238_s26, %s926_s30  ;;  %p931_p5 = scmp.lt.u32.totalorder %s1238_s26, %s1347_s2 }
 0x15b   : > { %p932_p10 = scmp.lt.u32.totalorder %s930_s10, %s926_s30  ;;  %p934_p4 = scmp.lt.u32.totalorder %s926_s30, %s1238_s26 }
 0x15c   : > { %p928_p1 = pnand %p927_p9, %p1130_p12 }
 0x15d   : > { %p933_p2 = por %p932_p10, %p931_p5 }
 0x15e   : > { %p929_p0 = pneg %p928_p1 }
 0x15f   : > { %p935_p6 = por %p934_p4, %p933_p2 }
 0x161   : > { %p936_p8 = pnand %p935_p6, %p929_p0 }
 0x163   : > { %939 = shalt.err (!%p936_p8)
}
 0x164   : > { %s1021_s20 = smov 128   ;;  %s1022_s8 = smov 8   ;;  %v486_v47 = vmul.f32 %v746_v32, %v746_v32  ;;  %v464_v48 = vadd.f32 %v746_v32, %v463_v45  ;;  %v500_v49 = vadd.f32 %v499_v44, %v485_v46  ;;  %v487_v50 = vmul.f32 %v747_v40, %v747_v40 }
 0x165   : > { %778 = dma.vmem_to_hbm [thread:$0]  (%p1130_p12), %s1240_s9, 2048, %s1238_s26, %s525_s5, %s1021_s20, %s1021_s20, %s1022_s8   ;;  %v488_v53 = vmul.f32 %v1211_v19, %v1211_v19  ;;  %v489_v58 = vmul.f32 %v1221_v23, %v1221_v23  ;;  %v490_v59 = vmul.f32 %v1204_v17, %v1204_v17  ;;  %v491_v62 = vmul.f32 %v1216_v21, %v1216_v21 }
 0x166   : > { %v501_v51 = vadd.f32 %v500_v49, %v486_v47  ;;  %v465_v52 = vadd.f32 %v747_v40, %v464_v48  ;;  %v492_v1 = vmul.f32 %v1233_v36, %v1233_v36  ;;  %v493_v6 = vmul.f32 %v431_v43, %v431_v43  ;;  %s682_s9 = sshll.u32 %s1181_s6, 3  ;;  %s703_s4 = sshll.u32 %s1065_s16, 7 }
 0x167   : > { %v494_v7 = vmul.f32 %v1228_v34, %v1228_v34  ;;  %v495_v10 = vmul.f32 %v1245_v41, %v1245_v41  ;;  %s214_s25 = scalar_lea.vmem [#allocation8], %s682_s9  ;;  %s1302_s28 = scalar_lea.hbm %s1348_s3, %s703_s4 }
 0x168   : > { %v466_v54 = vadd.f32 %v465_v52, %v1211_v19  ;;  %v502_v55 = vadd.f32 %v501_v51, %v487_v50  ;;  %s559_s26 = sshll.u32 %s214_s25, 4  ;;  %s530_s23 = scalar_lea.sflag [#allocation9], %s1181_s6  ;;  %s1304_s26 = int_to_ptr.vmem [resolvable:$true] %s559_s26 }
 0x169   : > { %s940_s16 = scalar_lea.vmem %s1304_s26, 128  ;;  %s1023_s29 = smov [#allocation8]  }
 0x16a   : > { %v503_v56 = vadd.f32 %v502_v55, %v488_v53  ;;  %v467_v57 = vadd.f32 %v466_v54, %v1221_v23  ;;  %p941_p11 = scmp.ne.s32.totalorder %s1304_s26, %s940_s16  ;;  %s944_s30 = sshll.u32 %s1023_s29, 4  ;;  %s945_s30 = int_to_ptr.vmem [resolvable:$false] %s944_s30 }
 0x16b   : > { %s946_s22 = scalar_lea.vmem %s945_s30, 256  ;;  %p947_p7 = scmp.lt.s32.totalorder %s1304_s26, %s945_s30 }
 0x16c   : > { %v468_v60 = vadd.f32 %v1204_v17, %v467_v57  ;;  %v504_v61 = vadd.f32 %v503_v56, %v489_v58  ;;  %v517_v17 = vlaneseq  ;;  %p942_p13 = pnand %p941_p11, %p1130_p12  ;;  %p948_p9 = scmp.lt.s32.totalorder %s946_s22, %s940_s16 }
 0x16e   : > { %v505_v63 = vadd.f32 %v504_v61, %v490_v59  ;;  %v469_v0 = vadd.f32 %v1216_v21, %v468_v60  ;;  %v518_v22 = vshrl.u32 %v517_v17, 7  ;;  %p943_p3 = pneg %p942_p13  ;;  %p949_p1 = por %p948_p9, %p947_p7 }
 0x170   : > { %v470_v2 = vadd.f32 %v469_v0, %v1233_v36  ;;  %v506_v3 = vadd.f32 %v505_v63, %v491_v62  ;;  %vm520_vm0 = vcmp.eq.s32.totalorder %v518_v22, 1  ;;  %vm519_vm1 = vcmp.eq.s32.totalorder %v518_v22, 0  ;;  %p950_p0 = pnand %p949_p1, %p943_p3 }
 0x172   : > { %v507_v4 = vadd.f32 %v506_v3, %v492_v1  ;;  %v471_v5 = vadd.f32 %v470_v2, %v431_v43 }
 0x174   : > { %v472_v8 = vadd.f32 %v1228_v34, %v471_v5  ;;  %v508_v9 = vadd.f32 %v507_v4, %v493_v6 }
 0x176   : > { %v473_v11 = vadd.f32 %v1245_v41, %v472_v8  ;;  %v509_v12 = vadd.f32 %v508_v9, %v494_v7 }
 0x178   : > { %v474_v13 = vrot.slane %v473_v11, 4  ;;  %v510_v14 = vadd.f32 %v509_v12, %v495_v10 }
 0x17a   : > { %v475_v15 = vadd.f32 %v474_v13, %v473_v11  ;;  %v511_v16 = vrot.slane %v510_v14, 4 }
 0x17c   : > { %v476_v18 = vrot.slane %v475_v15, 2  ;;  %v512_v19 = vadd.f32 %v511_v16, %v510_v14 }
 0x17e   : > { %v477_v20 = vadd.f32 %v476_v18, %v475_v15  ;;  %v513_v21 = vrot.slane %v512_v19, 2 }
 0x180   : > { %v514_v23 = vadd.f32 %v513_v21, %v512_v19  ;;  %v478_v24 = vrot.slane %v477_v20, 1 }
 0x182   : > { %v515_v25 = vrot.slane %v514_v23, 1  ;;  %v479_v27 = vadd.f32 %v478_v24, %v477_v20 }
 0x184   : > { %v516_v26 = vadd.f32 %v515_v25, %v514_v23 }
 0x186   : > { %v521_v28 = vsel %vm520_vm0, %v516_v26, 0.0 }
 0x187   : > { %v522_v29 = vsel %vm519_vm1, %v479_v27, %v521_v28 }
 0x188   : > { %523 = vst [vmem:[%s214_s25] sm:$0xff] %v522_v29 }
 0x189   : > { %953 = shalt.err (!%p950_p0)
}
 0x18a   : > { %s954_s6 = scalar_lea.hbm %s1302_s28, 128  ;;  %s958_s11 = scalar_lea.hbm %s1348_s3, 512 }
 0x18b   : > { %p955_p5 = scmp.ne.s32.totalorder %s1302_s28, %s954_s6  ;;  %p959_p4 = scmp.lt.u32.totalorder %s1302_s28, %s1348_s3 }
 0x18c   : > { %p960_p6 = scmp.lt.u32.totalorder %s958_s11, %s954_s6  ;;  %p962_p11 = scmp.lt.u32.totalorder %s954_s6, %s1302_s28 }
 0x18d   : > { %p956_p10 = pnand %p955_p5, %p1130_p12 }
 0x18e   : > { %p961_p8 = por %p960_p6, %p959_p4 }
 0x18f   : > { %p957_p2 = pneg %p956_p10 }
 0x190   : > { %p963_p13 = por %p962_p11, %p961_p8 }
 0x192   : > { %p964_p3 = pnand %p963_p13, %p957_p2 }
 0x194   : > { %967 = shalt.err (!%p964_p3)
}
 0x195   : > { %779 = dma.vmem_to_hbm [thread:$0]  (%p1130_p12), %s1304_s26, 128, %s1302_s28, %s530_s23  }
 0x196 PF: > { %p800_p7 = scmp.ge.s32.totalorder %s1014_s15, 2  ;;  %s571_s8 = sand.u32 1, %s1002_s12  }
 0x197   : > { %p1363_p9 = scmp.ne.s32.totalorder %s1353_s19, 0  ;;  %s572_s9 = scalar_lea.sflag [#allocation4], %s571_s8 }
 0x199   : > { %p791_p1 = pnand %p800_p7, %p1363_p9 }
 0x19b   : > { %993 = dma.done.wait (!%p791_p1), %s572_s9, 2048  }
 0x19c   : > { %995 = vsyncadd (!%p791_p1), %s572_s9, 4294965248  ;;  %s581_s4 = scalar_lea.sflag [#allocation9], %s571_s8 }
 0x19d   : > { %997 = dma.done.wait (!%p791_p1), %s581_s4, 128  }
 0x19e   : > { %999 = vsyncadd (!%p791_p1), %s581_s4, 4294967168  ;;  %p21_p12 = scmp.ge.s32.totalorder %s1097_s24, 6   ;;  %s1364_s12 = smov %s1006_s13 }
 0x19f   : > { %s1365_s13 = smov %s1010_s14  ;;  %s1366_s14 = smov %s1126_s17 }
 0x1a0   : > { %s1367_s15 = smov %s1097_s24  ;;  %23 = sbr.rel (!%p21_p12) target bundleno = 8 (0x8), region = 94 }
 0x1a7   :  { %586 = vsyncpa [#allocation3], 1 }
 0x1a8   :  { %588 = vsyncpa [#allocation3 + $0x1], 1 }
 0x1a9   :  { %589 = vsyncpa [#allocation6], 1 }
 0x1aa   :  { %590 = vsyncpa [#allocation4], 1 }
 0x1ab   :  { %592 = vsyncpa [#allocation4 + $0x1], 1 }
 0x1ac   :  { %593 = vsyncpa [#allocation9], 1 }
 0x1ad   :  { %595 = vsyncpa [#allocation9 + $0x1], 1 }

</bundles_post_ra>
